<compile_context>
chip_gen: v5e
topology: v5e:2x2
jax: 0.10.0
libtpu: 0.0.40
codegen_flags: <defaults>
</compile_context>

<pallas_src>
from functools import partial

import numpy as np
import jax
import jax.numpy as jnp
from jax.experimental import pallas as pl
from jax.experimental.pallas import tpu as pltpu

_NEG = -1e30  # masks padded vocab lanes in the output bias (argmax / log_softmax safe)


@partial(jax.jit, static_argnames=("T", "B_real", "sos", "eos"))
def _greedy_decode(h0c, c0c, w_gate, w_out, b_out, *, T, B_real, sos, eos):
    """Fused greedy decode: T LSTM steps + Linear + log_softmax + argmax/EOS handling."""
    Bp, twoH = h0c.shape            # batch padded to a multiple of 8; 2H = [fwd | bwd]
    H = twoH // 2
    Kg = w_gate.shape[0]            # merged LHS width: [one_hot(Vp) | h(2H) | 1 | pad]
    Vp = w_out.shape[1]             # vocab padded to a multiple of 128 (lane-dense)
    cdt = w_gate.dtype              # MXU input dtype (bf16 by default, f32 optional)

    def kernel(h0_ref, c0_ref, wg_ref, wo_ref, bo_ref,
               out_ref, hn_ref, cn_ref, nstep_ref, lhs_ref, alive_ref):
        # ---- one-time init: small constants + running state buffers -------------------
        col_i = jax.lax.broadcasted_iota(jnp.int32, (Bp, Vp), 1)
        row_ok = jax.lax.broadcasted_iota(jnp.int32, (Bp, 1), 0) < B_real
        # LHS tail: a constant-1 lane (matches the bias row of the merged weight) + zeros.
        tail = (jax.lax.broadcasted_iota(jnp.int32, (Bp, Kg - Vp - twoH), 1) == 0).astype(cdt)

        x0 = (col_i == sos).astype(cdt)                   # SOS one-hot, built in matmul dtype
        hn_ref[...] = h0_ref[...]                         # running h lives in the output ref
        cn_ref[...] = c0_ref[...]                         # running c lives in the output ref
        lhs_ref[...] = jnp.concatenate([x0, h0_ref[...].astype(cdt), tail], axis=-1)
        alive_ref[0] = 1
        nstep_ref[0] = 0

        def step(t, carry):
            # Post-EOS iterations cost only this scalar branch (early-exit on EOS).
            @pl.when(alive_ref[0] == 1)
            def _():
                # NOTE: F.relu(input) is a no-op here — the decoder input is a one-hot.
                # One merged MXU op for both directions' four gates + bias
                # (K = Vp + 2H + 1 padded to 256, N = 8H).  Weights are re-read from VMEM
                # every step on purpose so they never live in vregs across the loop.
                gates = jnp.dot(lhs_ref[...], wg_ref[...],
                                preferred_element_type=jnp.float32)        # (Bp, 8H) f32
                # Columns are [i0 i1 f0 f1 o0 o1 | g0 g1]: one contiguous sigmoid slab and
                # one contiguous tanh slab -> 3 EUP vreg pushes, no select, no mask.
                act_s = jax.nn.sigmoid(gates[:, :6 * H])                   # i, f, o
                g_g = jnp.tanh(gates[:, 6 * H:])                           # g
                i_g = act_s[:, 0 * twoH:1 * twoH]
                f_g = act_s[:, 1 * twoH:2 * twoH]
                o_g = act_s[:, 2 * twoH:3 * twoH]
                c_new = f_g * cn_ref[...] + i_g * g_g                      # (Bp, 2H) f32
                h_new = o_g * jnp.tanh(c_new)                              # (Bp, 2H) = [fwd|bwd]

                logits = (jnp.dot(h_new.astype(cdt), wo_ref[...],
                                  preferred_element_type=jnp.float32)
                          + bo_ref[...])                                   # (Bp, Vp); pad ~ -1e30
                # Fused log_softmax (row-wise identical to the reference's post-concat call).
                m = jnp.max(logits, axis=-1, keepdims=True)
                s = logits - m
                lse = jnp.log(jnp.sum(jnp.exp(s), axis=-1, keepdims=True))
                out_ref[t] = s - lse                                       # lane-dense store

                # Greedy next input: (logits == row max) IS the one-hot (ties are
                # measure-zero), so no extra min-index lane reduce is needed.
                is_max = logits == m                                       # (Bp, Vp) bool
                lhs_ref[...] = jnp.concatenate(
                    [is_max.astype(cdt), h_new.astype(cdt), tail], axis=-1)
                hn_ref[...] = h_new
                cn_ref[...] = c_new
                nstep_ref[0] = t + 1
                # Reference breaks once ANY real batch row emits EOS; the EOS step itself
                # is still emitted and still updates the hidden state.
                hit = jnp.max(jnp.where(jnp.logical_and(is_max[:, eos:eos + 1], row_ok),
                                        1.0, 0.0))                         # scalar f32
                alive_ref[0] = (1.0 - hit).astype(jnp.int32)
            return carry

        jax.lax.fori_loop(0, T, step, 0)

    # Guard the T-scaled f32 output buffer against small scoped-VMEM defaults
    # (16 MiB on v5e, 32 MiB on v6e/v7x; v7x physical VMEM is only 64 MiB).
    need = (T * Bp * Vp * 4 + 2 * Bp * twoH * 4
            + w_gate.size * w_gate.dtype.itemsize
            + w_out.size * w_out.dtype.itemsize + b_out.size * 4
            + Bp * Kg * w_gate.dtype.itemsize
            + (4 << 20))                              # headroom for compiler scratch
    cparams = (pltpu.CompilerParams(vmem_limit_bytes=int(min(need, 96 << 20)))
               if need > (16 << 20) else None)

    vspec = lambda: pl.BlockSpec(memory_space=pltpu.MemorySpace.VMEM)
    return pl.pallas_call(
        kernel,
        out_shape=(
            jax.ShapeDtypeStruct((T, Bp, Vp), jnp.float32),   # per-step log-probs
            jax.ShapeDtypeStruct((Bp, twoH), jnp.float32),    # final h (both dirs)
            jax.ShapeDtypeStruct((Bp, twoH), jnp.float32),    # final c (both dirs)
            jax.ShapeDtypeStruct((1,), jnp.int32),            # number of emitted steps
        ),
        in_specs=[vspec() for _ in range(5)],
        out_specs=(vspec(), vspec(), vspec(),
                   pl.BlockSpec(memory_space=pltpu.MemorySpace.SMEM)),
        scratch_shapes=[
            pltpu.VMEM((Bp, Kg), cdt),                        # merged decoder-input LHS
            pltpu.SMEM((1,), jnp.int32),                      # 'alive' early-exit flag
        ],
        compiler_params=cparams,
    )(h0c, c0c, w_gate, w_out, b_out)


class DecoderRNNPallas:
    """JAX/Pallas re-implementation of DecoderRNN.forward (greedy decode path)."""

    def __init__(self, hidden_size, output_dict, max_length, key,
                 matmul_dtype=jnp.bfloat16):
        self.output_dict = output_dict
        self.hidden_size = hidden_size
        self.max_length = max_length
        self.output_size = len(output_dict)
        self.sos = output_dict['SOS']
        self.eos = output_dict['EOS']

        H, V = hidden_size, self.output_size
        Vp = ((V + 127) // 128) * 128                  # lane-dense vocab padding
        Kg = ((Vp + 2 * H + 1 + 127) // 128) * 128     # merged-LHS width incl. bias lane
        self.Vp, self.Kg = Vp, Kg

        # Deterministic synthetic init mirroring PyTorch's uniform(-1/sqrt(fan_in), ...).
        k_lstm = 1.0 / (H ** 0.5)
        k_out = 1.0 / ((2 * H) ** 0.5)
        ks = jax.random.split(key, 6)
        u = lambda k, shape, b: np.asarray(jax.random.uniform(k, shape, jnp.float32, -b, b))
        w_ih = u(ks[0], (2, 4 * H, V), k_lstm)         # [dir, (i,f,g,o)*H, V]
        w_hh = u(ks[1], (2, 4 * H, H), k_lstm)
        b_ih = u(ks[2], (2, 4 * H), k_lstm)
        b_hh = u(ks[3], (2, 4 * H), k_lstm)
        w_out = u(ks[4], (V, 2 * H), k_out)
        b_out = u(ks[5], (V,), k_out)

        # One merged gate weight for the single-MXU step matmul:
        #   rows [0, Vp)      : one-hot input -> gates (rows V..Vp-1 are zero padding)
        #   rows [Vp, Vp+2H)  : hidden [dir0 | dir1] -> gates (block-diagonal over dirs)
        #   row  Vp+2H        : b_ih + b_hh (matched by a constant-1 LHS lane)
        # Column blocks (each 2H wide, [dir0 | dir1] inside): [i, f, o, g] so sigmoid covers
        # one contiguous 6H slab and tanh one 2H slab, and every 2H gate slice lines up with
        # the [dir0 | dir1] state layout.
        wg = np.zeros((Kg, 8 * H), np.float32)
        for p, gi in enumerate((0, 1, 3, 2)):          # dest blocks [i f o g] <- torch (i f g o)
            for d in range(2):                         # forward, reverse direction
                col = (2 * p + d) * H
                wg[:V, col:col + H] = w_ih[d, gi * H:(gi + 1) * H, :].T
                wg[Vp + d * H:Vp + (d + 1) * H, col:col + H] = \
                    w_hh[d, gi * H:(gi + 1) * H, :].T
                wg[Vp + 2 * H, col:col + H] = (b_ih[d, gi * H:(gi + 1) * H]
                                               + b_hh[d, gi * H:(gi + 1) * H])
        wout_p = np.zeros((2 * H, Vp), np.float32)
        wout_p[:, :V] = w_out.T
        bout_p = np.full((1, Vp), _NEG, np.float32)    # padded vocab lanes -> -1e30
        bout_p[0, :V] = b_out

        # bf16 weights feed the MXU natively on v6e/v7x (and halve the one-shot weight DMA
        # on v5e); the output bias / pad mask stays f32 and is added after f32 accumulation.
        self.w_gate = jnp.asarray(wg, dtype=matmul_dtype)
        self.w_out = jnp.asarray(wout_p, dtype=matmul_dtype)
        self.b_out = jnp.asarray(bout_p)

    def forward(self, encoder_hidden, target_onehot=None, max_loop=None):
        # TODO(synk): teacher-forcing / target_onehot branch not translated — in the
        # reference it feeds a 2-D tensor to a batch_first LSTM (ill-defined) and
        # use_teacher_forcing is always False since torch.rand(1) < 0 never holds.
        assert target_onehot is None, \
            "only the target_onehot=None (greedy decode) path is implemented"
        h0, c0 = encoder_hidden                        # each (2, B, H)
        B = h0.shape[1]
        H = self.hidden_size
        V = self.output_size
        T = int(max_loop) if max_loop is not None else self.max_length
        # Sublane padding.  To raise MXU utilization, pack more independent decode
        # requests into Bp (serial recurrence: do NOT split across TensorCores).
        Bp = max(8, ((B + 7) // 8) * 8)

        # Pack (2, B, H) state into the kernel's (Bp, 2H) lane-concatenated layout.
        h0c = jnp.zeros((Bp, 2 * H), jnp.float32).at[:B, :H].set(h0[0]).at[:B, H:].set(h0[1])
        c0c = jnp.zeros((Bp, 2 * H), jnp.float32).at[:B, :H].set(c0[0]).at[:B, H:].set(c0[1])

        logp, hn_cat, cn_cat, nsteps = _greedy_decode(
            h0c, c0c, self.w_gate, self.w_out, self.b_out,
            T=T, B_real=B, sos=self.sos, eos=self.eos)

        # ONE host sync per forward(): number of emitted steps (EOS break semantics).
        n = int(jax.device_get(nsteps)[0])

        decoder_outputs = jnp.transpose(logp[:n, :B, :V], (1, 0, 2))   # (B, n, V)
        hn = jnp.stack([hn_cat[:B, :H], hn_cat[:B, H:]], axis=0)       # (2, B, H)
        cn = jnp.stack([cn_cat[:B, :H], cn_cat[:B, H:]], axis=0)
        return decoder_outputs, (hn, cn)


if __name__ == "__main__":
    B, H = 2, 32
    tokens = ['SOS', 'EOS', 'PAD'] + [chr(ord('a') + i) for i in range(13)]
    output_dict = {t: i for i, t in enumerate(tokens)}   # output_size = 16
    max_length = 8

    key = jax.random.PRNGKey(0)
    k_param, k_h, k_c = jax.random.split(key, 3)

    model = DecoderRNNPallas(H, output_dict, max_length, k_param)

    # encoder_hidden = (h0, c0), each (num_directions * num_layers = 2, B, H)
    h0 = jax.random.normal(k_h, (2, B, H), jnp.float32)
    c0 = jax.random.normal(k_c, (2, B, H), jnp.float32)

    decoder_outputs, (hn, cn) = model.forward((h0, c0))
    jax.block_until_ready((decoder_outputs, hn, cn))
    print("KERNEL_OK")
</pallas_src>

<mosaic_0001>
module attributes {stable_mosaic.version = 11 : i64} {
  func.func @kernel(%arg0: memref<8x64xf32, #tpu.memory_space<vmem>>, %arg1: memref<8x64xf32, #tpu.memory_space<vmem>>, %arg2: memref<256x256xbf16, #tpu.memory_space<vmem>>, %arg3: memref<64x128xbf16, #tpu.memory_space<vmem>>, %arg4: memref<1x128xf32, #tpu.memory_space<vmem>>, %arg5: memref<8x8x128xf32, #tpu.memory_space<vmem>>, %arg6: memref<8x64xf32, #tpu.memory_space<vmem>>, %arg7: memref<8x64xf32, #tpu.memory_space<vmem>>, %arg8: memref<1xi32, #tpu.memory_space<smem>>, %arg9: memref<8x256xbf16, #tpu.memory_space<vmem>>, %arg10: memref<1xi32, #tpu.memory_space<smem>>) attributes {dimension_semantics = [], scalar_prefetch = 0 : i64, scratch_operands = 2 : i64, tpu.core_type = #tpu.core_type<tc>} {
    %0 = tpu.iota {dimensions = array<i32: 1>} : vector<8x128xi32>
    %1 = tpu.iota {dimensions = array<i32: 0>} : vector<8x1xi32>
    %c2_i32 = arith.constant 2 : i32
    %2 = vector.broadcast %c2_i32 : i32 to vector<8x1xi32>
    %3 = arith.cmpi slt, %1, %2 : vector<8x1xi32>
    %4 = tpu.iota {dimensions = array<i32: 1>} : vector<8x64xi32>
    %c0_i32 = arith.constant 0 : i32
    %5 = vector.broadcast %c0_i32 : i32 to vector<8x64xi32>
    %6 = arith.cmpi eq, %4, %5 : vector<8x64xi32>
    %7 = arith.extui %6 : vector<8x64xi1> to vector<8x64xi32>
    %8 = arith.sitofp %7 : vector<8x64xi32> to vector<8x64xf32>
    %9 = arith.truncf %8 : vector<8x64xf32> to vector<8x64xbf16>
    %c0_i32_0 = arith.constant 0 : i32
    %10 = vector.broadcast %c0_i32_0 : i32 to vector<8x128xi32>
    %11 = arith.cmpi eq, %0, %10 : vector<8x128xi32>
    %12 = arith.extui %11 : vector<8x128xi1> to vector<8x128xi32>
    %13 = arith.sitofp %12 : vector<8x128xi32> to vector<8x128xf32>
    %14 = arith.truncf %13 : vector<8x128xf32> to vector<8x128xbf16>
    %c0 = arith.constant 0 : index
    %c0_1 = arith.constant 0 : index
    %15 = vector.load %arg0[%c0, %c0_1] : memref<8x64xf32, #tpu.memory_space<vmem>>, vector<8x64xf32>
    %c0_2 = arith.constant 0 : index
    %c0_3 = arith.constant 0 : index
    %16 = vector.load %arg6[%c0_2, %c0_3] : memref<8x64xf32, #tpu.memory_space<vmem>>, vector<8x64xf32>
    tpu.vector_store %arg6[%c0_2, %c0_3], %15 {strides = array<i32>} : memref<8x64xf32, #tpu.memory_space<vmem>>, vector<8x64xf32>,
    %c0_4 = arith.constant 0 : index
    %c0_5 = arith.constant 0 : index
    %17 = vector.load %arg1[%c0_4, %c0_5] : memref<8x64xf32, #tpu.memory_space<vmem>>, vector<8x64xf32>
    %c0_6 = arith.constant 0 : index
    %c0_7 = arith.constant 0 : index
    %18 = vector.load %arg7[%c0_6, %c0_7] : memref<8x64xf32, #tpu.memory_space<vmem>>, vector<8x64xf32>
    tpu.vector_store %arg7[%c0_6, %c0_7], %17 {strides = array<i32>} : memref<8x64xf32, #tpu.memory_space<vmem>>, vector<8x64xf32>,
    %c0_8 = arith.constant 0 : index
    %c0_9 = arith.constant 0 : index
    %19 = vector.load %arg0[%c0_8, %c0_9] : memref<8x64xf32, #tpu.memory_space<vmem>>, vector<8x64xf32>
    %20 = arith.truncf %19 : vector<8x64xf32> to vector<8x64xbf16>
    %21 = tpu.concatenate %14, %20, %9 in 1 : vector<8x128xbf16>, vector<8x64xbf16>, vector<8x64xbf16> -> vector<8x256xbf16>
    %c0_10 = arith.constant 0 : index
    %c0_11 = arith.constant 0 : index
    %22 = vector.load %arg9[%c0_10, %c0_11] : memref<8x256xbf16, #tpu.memory_space<vmem>>, vector<8x256xbf16>
    tpu.vector_store %arg9[%c0_10, %c0_11], %21 {strides = array<i32>} : memref<8x256xbf16, #tpu.memory_space<vmem>>, vector<8x256xbf16>,
    %c1_i32 = arith.constant 1 : i32
    %c0_12 = arith.constant 0 : index
    %23 = memref.load %arg10[%c0_12] : memref<1xi32, #tpu.memory_space<smem>>
    memref.store %c1_i32, %arg10[%c0_12] : memref<1xi32, #tpu.memory_space<smem>>
    %c0_i32_13 = arith.constant 0 : i32
    %c0_14 = arith.constant 0 : index
    %24 = memref.load %arg8[%c0_14] : memref<1xi32, #tpu.memory_space<smem>>
    memref.store %c0_i32_13, %arg8[%c0_14] : memref<1xi32, #tpu.memory_space<smem>>
    %c0_i32_15 = arith.constant 0 : i32
    %c8_i32 = arith.constant 8 : i32
    %25 = arith.addi %c0_i32_15, %c8_i32 : i32
    %c1_i32_16 = arith.constant 1 : i32
    scf.for %arg11 = %c0_i32_15 to %25 step %c1_i32_16  : i32 {
      %c0_18 = arith.constant 0 : index
      %26 = memref.load %arg10[%c0_18] : memref<1xi32, #tpu.memory_space<smem>>
      %c1_i32_19 = arith.constant 1 : i32
      %27 = arith.cmpi eq, %26, %c1_i32_19 : i32
      %28 = arith.extui %27 : i1 to i32
      %c0_i32_20 = arith.constant 0 : i32
      %29 = arith.cmpi ne, %28, %c0_i32_20 : i32
      scf.if %29 {
        %c0_21 = arith.constant 0 : index
        %c0_22 = arith.constant 0 : index
        %30 = vector.load %arg9[%c0_21, %c0_22] : memref<8x256xbf16, #tpu.memory_space<vmem>>, vector<8x256xbf16>
        %c0_23 = arith.constant 0 : index
        %c0_24 = arith.constant 0 : index
        %31 = vector.load %arg2[%c0_23, %c0_24] : memref<256x256xbf16, #tpu.memory_space<vmem>>, vector<256x256xbf16>
        %cst = arith.constant dense<0.000000e+00> : vector<8x256xf32>
        %32 = tpu.matmul %30, %31, %cst {dimension_numbers = #tpu.dot_dimension_numbers<[1], [0], [0], [1], [0, 0, 1, 1], [], []>} : vector<8x256xbf16>, vector<256x256xbf16>, vector<8x256xf32> -> vector<8x256xf32>
        %33 = vector.extract_strided_slice %32 {offsets = [0, 0], sizes = [8, 192], strides = [1, 1]} : vector<8x256xf32> to vector<8x192xf32>
        %34 = arith.negf %33 : vector<8x192xf32>
        %35 = math.exp %34 : vector<8x192xf32>
        %cst_25 = arith.constant 1.000000e+00 : f32
        %36 = vector.broadcast %cst_25 : f32 to vector<8x192xf32>
        %37 = arith.addf %36, %35 : vector<8x192xf32>
        %38 = arith.divf %36, %37 : vector<8x192xf32>
        %39 = vector.extract_strided_slice %32 {offsets = [0, 192], sizes = [8, 64], strides = [1, 1]} : vector<8x256xf32> to vector<8x64xf32>
        %40 = math.tanh %39 : vector<8x64xf32>
        %41 = vector.extract_strided_slice %38 {offsets = [0, 0], sizes = [8, 64], strides = [1, 1]} : vector<8x192xf32> to vector<8x64xf32>
        %42 = vector.extract_strided_slice %38 {offsets = [0, 64], sizes = [8, 64], strides = [1, 1]} : vector<8x192xf32> to vector<8x64xf32>
        %43 = vector.extract_strided_slice %38 {offsets = [0, 128], sizes = [8, 64], strides = [1, 1]} : vector<8x192xf32> to vector<8x64xf32>
        %c0_26 = arith.constant 0 : index
        %c0_27 = arith.constant 0 : index
        %44 = vector.load %arg7[%c0_26, %c0_27] : memref<8x64xf32, #tpu.memory_space<vmem>>, vector<8x64xf32>
        %45 = arith.mulf %42, %44 : vector<8x64xf32>
        %46 = arith.mulf %41, %40 : vector<8x64xf32>
        %47 = arith.addf %45, %46 : vector<8x64xf32>
        %48 = math.tanh %47 : vector<8x64xf32>
        %49 = arith.mulf %43, %48 : vector<8x64xf32>
        %50 = arith.truncf %49 : vector<8x64xf32> to vector<8x64xbf16>
        %c0_28 = arith.constant 0 : index
        %c0_29 = arith.constant 0 : index
        %51 = vector.load %arg3[%c0_28, %c0_29] : memref<64x128xbf16, #tpu.memory_space<vmem>>, vector<64x128xbf16>
        %cst_30 = arith.constant dense<0.000000e+00> : vector<8x128xf32>
        %52 = tpu.matmul %50, %51, %cst_30 {dimension_numbers = #tpu.dot_dimension_numbers<[1], [0], [0], [1], [0, 0, 1, 1], [], []>} : vector<8x64xbf16>, vector<64x128xbf16>, vector<8x128xf32> -> vector<8x128xf32>
        %c0_31 = arith.constant 0 : index
        %c0_32 = arith.constant 0 : index
        %53 = vector.load %arg4[%c0_31, %c0_32] : memref<1x128xf32, #tpu.memory_space<vmem>>, vector<1x128xf32>
        %54 = vector.broadcast %53 : vector<1x128xf32> to vector<8x128xf32>
        %55 = arith.addf %52, %54 : vector<8x128xf32>
        %cst_33 = arith.constant dense<0xFF800000> : vector<8xf32>
        %56 = vector.multi_reduction <maximumf>, %55, %cst_33 [1] : vector<8x128xf32> to vector<8xf32>
        %57 = vector.shape_cast %56 : vector<8xf32> to vector<8x1xf32>
        %58 = vector.broadcast %57 : vector<8x1xf32> to vector<8x128xf32>
        %59 = arith.subf %55, %58 : vector<8x128xf32>
        %60 = math.exp %59 : vector<8x128xf32>
        %cst_34 = arith.constant dense<0.000000e+00> : vector<8xf32>
        %61 = vector.multi_reduction <add>, %60, %cst_34 [1] : vector<8x128xf32> to vector<8xf32>
        %62 = vector.shape_cast %61 : vector<8xf32> to vector<8x1xf32>
        %63 = math.log %62 : vector<8x1xf32>
        %64 = vector.broadcast %63 : vector<8x1xf32> to vector<8x128xf32>
        %65 = arith.subf %59, %64 : vector<8x128xf32>
        %66 = arith.index_cast %arg11 : i32 to index
        %c0_35 = arith.constant 0 : index
        %c0_36 = arith.constant 0 : index
        %67 = vector.load %arg5[%66, %c0_35, %c0_36] : memref<8x8x128xf32, #tpu.memory_space<vmem>>, vector<1x8x128xf32>
        %68 = vector.shape_cast %67 : vector<1x8x128xf32> to vector<8x128xf32>
        %69 = vector.shape_cast %65 : vector<8x128xf32> to vector<1x8x128xf32>
        tpu.vector_store %arg5[%66, %c0_35, %c0_36], %69 {strides = array<i32>} : memref<8x8x128xf32, #tpu.memory_space<vmem>>, vector<1x8x128xf32>,
        %70 = vector.broadcast %57 : vector<8x1xf32> to vector<8x128xf32>
        %71 = arith.cmpf oeq, %55, %70 : vector<8x128xf32>
        %72 = arith.extui %71 : vector<8x128xi1> to vector<8x128xi32>
        %73 = arith.sitofp %72 : vector<8x128xi32> to vector<8x128xf32>
        %74 = arith.truncf %73 : vector<8x128xf32> to vector<8x128xbf16>
        %75 = arith.truncf %49 : vector<8x64xf32> to vector<8x64xbf16>
        %76 = tpu.concatenate %74, %75, %9 in 1 : vector<8x128xbf16>, vector<8x64xbf16>, vector<8x64xbf16> -> vector<8x256xbf16>
        %c0_37 = arith.constant 0 : index
        %c0_38 = arith.constant 0 : index
        %77 = vector.load %arg9[%c0_37, %c0_38] : memref<8x256xbf16, #tpu.memory_space<vmem>>, vector<8x256xbf16>
        tpu.vector_store %arg9[%c0_37, %c0_38], %76 {strides = array<i32>} : memref<8x256xbf16, #tpu.memory_space<vmem>>, vector<8x256xbf16>,
        %c0_39 = arith.constant 0 : index
        %c0_40 = arith.constant 0 : index
        %78 = vector.load %arg6[%c0_39, %c0_40] : memref<8x64xf32, #tpu.memory_space<vmem>>, vector<8x64xf32>
        tpu.vector_store %arg6[%c0_39, %c0_40], %49 {strides = array<i32>} : memref<8x64xf32, #tpu.memory_space<vmem>>, vector<8x64xf32>,
        %c0_41 = arith.constant 0 : index
        %c0_42 = arith.constant 0 : index
        %79 = vector.load %arg7[%c0_41, %c0_42] : memref<8x64xf32, #tpu.memory_space<vmem>>, vector<8x64xf32>
        tpu.vector_store %arg7[%c0_41, %c0_42], %47 {strides = array<i32>} : memref<8x64xf32, #tpu.memory_space<vmem>>, vector<8x64xf32>,
        %c1_i32_43 = arith.constant 1 : i32
        %80 = arith.addi %arg11, %c1_i32_43 : i32
        %c0_44 = arith.constant 0 : index
        %81 = memref.load %arg8[%c0_44] : memref<1xi32, #tpu.memory_space<smem>>
        memref.store %80, %arg8[%c0_44] : memref<1xi32, #tpu.memory_space<smem>>
        %82 = vector.extract_strided_slice %71 {offsets = [0, 1], sizes = [8, 1], strides = [1, 1]} : vector<8x128xi1> to vector<8x1xi1>
        %83 = arith.andi %82, %3 : vector<8x1xi1>
        %cst_45 = arith.constant 1.000000e+00 : f32
        %cst_46 = arith.constant 0.000000e+00 : f32
        %84 = vector.broadcast %cst_45 : f32 to vector<8x1xf32>
        %85 = vector.broadcast %cst_46 : f32 to vector<8x1xf32>
        %86 = arith.select %83, %84, %85 : vector<8x1xi1>, vector<8x1xf32>
        %87 = vector.shape_cast %86 : vector<8x1xf32> to vector<1x8x1xf32>
        %cst_47 = arith.constant dense<0xFF800000> : vector<1xf32>
        %88 = vector.multi_reduction <maximumf>, %87, %cst_47 [1, 2] : vector<1x8x1xf32> to vector<1xf32>
        %89 = vector.shape_cast %88 : vector<1xf32> to vector<1x1x1xf32>
        %90 = vector.extract %89[0, 0, 0] : f32 from vector<1x1x1xf32>
        %cst_48 = arith.constant 1.000000e+00 : f32
        %91 = arith.subf %cst_48, %90 : f32
        %92 = arith.fptosi %91 : f32 to i32
        %c0_49 = arith.constant 0 : index
        %93 = memref.load %arg10[%c0_49] : memref<1xi32, #tpu.memory_space<smem>>
        memref.store %92, %arg10[%c0_49] : memref<1xi32, #tpu.memory_space<smem>>
      } else {
      }
    }
    %c8_i32_17 = arith.constant 8 : i32
    return
  }
}

</mosaic_0001>

<bundles_post_ra>
// kernel: _greedy_decode.1
= control target key start
LH: loop header
LB: loop body
LE: loop exit
PB: predicated region body
PF: predicated region fallthrough
CT: control target
= control target key end

     0   :  { %14 = vsyncpa [#allocation5], 0  ;;  %s1182_s0 = inlined_call_operand.hbm [shape: f32[8,64], index: 0, kind: input, shape index: {}]   ;;  %s1183_s1 = inlined_call_operand.hbm [shape: f32[8,64], index: 1, kind: input, shape index: {}]   ;;  %s1184_s2 = inlined_call_operand.hbm [shape: bf16[256,256], index: 2, kind: input, shape index: {}]   ;;  %s1185_s3 = inlined_call_operand.hbm [shape: bf16[64,128], index: 3, kind: input, shape index: {}]   ;;  %s1186_s4 = inlined_call_operand.vmem [shape: f32[1,128], index: 4, kind: input, shape index: {}]   ;;  %s1187_s5 = inlined_call_operand.hbm [shape: f32[8,8,128], index: 5, kind: output, shape index: {0}]   ;;  %s1188_s6 = inlined_call_operand.hbm [shape: f32[8,64], index: 6, kind: output, shape index: {1}]   ;;  %s1189_s7 = inlined_call_operand.hbm [shape: f32[8,64], index: 7, kind: output, shape index: {2}]   ;;  %s1190_s8 = inlined_call_operand.hbm [shape: s32[1], index: 8, kind: output, shape index: {3}]  }
   0x1   :  { %15 = vsyncpa [#allocation9], 0 }
   0x2   :  { %16 = vsyncpa [#allocation12], 0 }
   0x3   :  { %17 = vsyncpa [#allocation6], 0 }
   0x4   :  { %18 = vsyncpa [#allocation15], 0  ;;  %s36_s29 = sshll.u32 %s1183_s1, 4  ;;  %s37_s29 = int_to_ptr.hbm [resolvable:$true] %s36_s29 }
   0x5   :  { %19 = vsyncpa [#allocation7], 0  ;;  %s1056_s30 = smov [#allocation8]   ;;  %s25_s12 = sshll.u32 %s1182_s0, 4  ;;  %s26_s12 = int_to_ptr.hbm [resolvable:$true] %s25_s12 }
   0x6   :  { %s38_s9 = sshll.u32 %s1056_s30, 4  ;;  %s1057_s13 = smov [#allocation4]   ;;  %s39_s9 = int_to_ptr.vmem [resolvable:$true] %s38_s9 }
   0x7   :  { %41 = dma.hbm_to_vmem [thread:$0]  %s37_s29, 128, %s39_s9, [#allocation9]  }
   0x8   :  { %s27_s14 = sshll.u32 %s1057_s13, 4  ;;  %s46_s17 = sshll.u32 %s1184_s2, 4  ;;  %s28_s14 = int_to_ptr.vmem [resolvable:$true] %s27_s14  ;;  %s47_s17 = int_to_ptr.hbm [resolvable:$true] %s46_s17 }
   0x9   :  { %30 = dma.hbm_to_vmem [thread:$0]  %s26_s12, 128, %s28_s14, [#allocation5]  }
   0xa   :  { %s1058_s1 = smov [#allocation10]   ;;  %s59_s21 = sshll.u32 %s1185_s3, 4  ;;  %s60_s21 = int_to_ptr.hbm [resolvable:$true] %s59_s21 }
   0xb   :  { %s48_s18 = sshll.u32 %s1058_s1, 4  ;;  %s1059_s22 = smov 128   ;;  %s49_s18 = int_to_ptr.vmem [resolvable:$true] %s48_s18 }
   0xc   :  { %s1060_s0 = smov 8   ;;  %s1061_s23 = smov [#allocation11]  }
   0xd   :  { %54 = dma.hbm_to_vmem [thread:$0]  %s47_s17, 4096, %s49_s18, [#allocation9], %s1059_s22, %s1059_s22, %s1060_s0  }
   0xe   :  { %s61_s24 = sshll.u32 %s1061_s23, 4  ;;  %s1062_s2 = smov 64   ;;  %s62_s24 = int_to_ptr.vmem [resolvable:$true] %s61_s24 }
   0xf   :  { %s1063_s25 = smov 4  }
  0x10   :  { %67 = dma.hbm_to_vmem [thread:$0]  %s60_s21, 512, %s62_s24, [#allocation12], %s1062_s2, %s1062_s2, %s1063_s25  }
  0x11   :  { %1040 = dma.done.wait [#allocation5], 128  }
  0x12   :  { %1041 = vsyncadd [#allocation5], 4294967168 }
  0x13   :  { %1042 = dma.done.wait [#allocation9], 4224  }
  0x14   :  { %1043 = vsyncadd [#allocation9], 4294963072  ;;  %v87_v0 = vlaneseq }
  0x15   :  { %1044 = dma.done.wait [#allocation12], 512  }
  0x16   :  { %1045 = vsyncadd [#allocation12], 4294966784  ;;  %s1064_s3 = smov 1   ;;  %v88_v1 = vand.u32 127, %v87_v0  ;;  %v1133_v2 = vshrl.u32 %v87_v0, 7  ;;  %s1065_s26 = smov 0  }
  0x17   :  { %117 = sst [smem:[#allocation3]] %s1064_s3  ;;  %v1066_v3 = vmov 0.0   ;;  %v96_v6 = vld [vmem:[#allocation4] sm:$0xff]  ;;  %vm97_vm2 = vcmask 523264   ;;  %v99_v7 = vld [vmem:[#allocation8] sm:$0xff]  ;;  %s1142_s27 = smov 0  }
  0x18   :  { %119 = sst [smem:[#allocation17]] %s1065_s26  ;;  %vm91_vm0 = vcmp.lt.s32.totalorder %v1133_v2, 2  ;;  %vm92_vm1 = vcmp.eq.s32.totalorder %v88_v1, 0  ;;  %98 = vst.msk [vmem:[#allocation14] sm:$0xff] %vm97_vm2, %v96_v6  ;;  %v102_v9 = vpack.c.bf16 %v96_v6, %v96_v6 }
  0x19   :  { %v620_v4 = vsel %vm92_vm1, 1.0, %v1066_v3  ;;  %100 = vst.msk [vmem:[#allocation16] sm:$0xff] %vm97_vm2, %v99_v7 }
  0x1a   :  { %v95_v5 = vpack.c.bf16 %v620_v4, %v620_v4 }
  0x1c   :  { %v104_v8 = vperm.slane %v95_v5, 0  ;;  %v111_v10 = vunpack.c.l.b16 %v95_v5 }
  0x1e   :  { %105 = vrot.lane.b32.xlu0 %v104_v8, %s1062_s2 }
  0x90   :  { %v1138_v11 = vpop.permute.xlu0 %105 }
  0x91   :  { %v109_v12 = vsel %vm97_vm2, %v102_v9, %v1138_v11 }
  0x92   :  { %v112_v13 = vunpack.c.l.b16 %v109_v12 }
  0x94   :  { %v113_v14 = vpack.c.b16 %v112_v13, %v111_v10 }
  0x96   :  { %115 = vst [vmem:[#allocation2] sm:$0xff] %v113_v14 }
  0x97 LB: > { %s126_s28 = sld [smem:[#allocation3]]  ;;  %s1054_s27 = sphi %s1142_s27, %s125_s27  }
  0x9d   : > { %p621_p0 = scmp.ne.s32.totalorder %s126_s28, 1 }
  0x9e   : > { %s1067_s29 = smov (!%p621_p0), 64   ;;  %s528_s10 = sadd.s32 (!%p621_p0), 1, %s1054_s27 }
  0x9f   : > { %130 = sbr.rel (%p621_p0) target bundleno = 1134 (0x46e), region = 48  ;;  %529 = sst [smem:[#allocation17]] (!%p621_p0), %s528_s10 }
  0xa0   : > { %s769_s11 = sshll.u32 (!%p621_p0), %s1054_s27, 3 }
  0xa1   : > { %s508_s12 = scalar_lea.vmem (!%p621_p0), [#allocation13], %s769_s11 }
  0xa4   : > { %v785_v15 = vld [vmem:[#allocation10 + $0x74] sm:$0xf]  ;;  %v682_v16 = vld [vmem:[#allocation10 + $0x78] sm:$0xf0]  ;;  %v783_v20 = vld [vmem:[#allocation10 + $0x64] sm:$0xf] }
  0xa5   : > { %v801_v17 = vld [vmem:[#allocation10 + $0xf4] sm:$0xf]  ;;  %v685_v18 = vor.u32 %v785_v15, %v682_v16  ;;  %v746_v19 = vld [vmem:[#allocation10 + $0xf8] sm:$0xf0]  ;;  %v674_v21 = vld [vmem:[#allocation10 + $0x68] sm:$0xf0] }
  0xa6   : > { %v749_v22 = vor.u32 %v801_v17, %v746_v19  ;;  %v799_v23 = vld [vmem:[#allocation10 + $0xe4] sm:$0xf]  ;;  %v738_v24 = vld [vmem:[#allocation10 + $0xe8] sm:$0xf0]  ;;  %v677_v25 = vor.u32 %v783_v20, %v674_v21  ;;  %v781_v27 = vld [vmem:[#allocation10 + $0x54] sm:$0xf] }
  0xa7   : > { %357 = vmatpush.bf16.msra.mxu2 %v685_v18  ;;  %v741_v26 = vor.u32 %v799_v23, %v738_v24  ;;  %v666_v28 = vld [vmem:[#allocation10 + $0x58] sm:$0xf0]  ;;  %v797_v29 = vld [vmem:[#allocation10 + $0xd4] sm:$0xf]  ;;  %v779_v33 = vld [vmem:[#allocation10 + $0x44] sm:$0xf] }
  0xa8   : > { %370 = vmatpush.bf16.msra.mxu3 %v749_v22  ;;  %v730_v30 = vld [vmem:[#allocation10 + $0xd8] sm:$0xf0]  ;;  %v669_v31 = vor.u32 %v781_v27, %v666_v28  ;;  %v658_v34 = vld [vmem:[#allocation10 + $0x48] sm:$0xf0]  ;;  %v795_v35 = vld [vmem:[#allocation10 + $0xc4] sm:$0xf] }
  0xa9   : > { %v733_v32 = vor.u32 %v797_v29, %v730_v30  ;;  %v722_v36 = vld [vmem:[#allocation10 + $0xc8] sm:$0xf0]  ;;  %v777_v37 = vld [vmem:[#allocation10 + $0x34] sm:$0xf]  ;;  %v650_v38 = vld [vmem:[#allocation10 + $0x38] sm:$0xf0]  ;;  %v661_v39 = vor.u32 %v779_v33, %v658_v34 }
  0xaa   : > { %v793_v40 = vld [vmem:[#allocation10 + $0xb4] sm:$0xf]  ;;  %v680_v41 = vld [vmem:[#allocation10 + $0x70] sm:$0xf]  ;;  %v786_v42 = vld [vmem:[#allocation10 + $0x74] sm:$0xf0]  ;;  %v725_v44 = vor.u32 %v795_v35, %v722_v36  ;;  %v653_v54 = vor.u32 %v777_v37, %v650_v38 }
  0xab   : > { %358 = vmatpush.bf16.msra.mxu2 %v677_v25  ;;  %v744_v43 = vld [vmem:[#allocation10 + $0xf0] sm:$0xf]  ;;  %v681_v45 = vor.u32 %v786_v42, %v680_v41  ;;  %v802_v46 = vld [vmem:[#allocation10 + $0xf4] sm:$0xf0]  ;;  %v672_v47 = vld [vmem:[#allocation10 + $0x60] sm:$0xf] }
  0xac   : > { %371 = vmatpush.bf16.msra.mxu3 %v741_v26  ;;  %v784_v48 = vld [vmem:[#allocation10 + $0x64] sm:$0xf0]  ;;  %v714_v49 = vld [vmem:[#allocation10 + $0xb8] sm:$0xf0]  ;;  %v745_v50 = vor.u32 %v802_v46, %v744_v43  ;;  %v736_v51 = vld [vmem:[#allocation10 + $0xe0] sm:$0xf] }
  0xad   : > { %v800_v52 = vld [vmem:[#allocation10 + $0xe4] sm:$0xf0]  ;;  %331 = vmatpush.bf16.msra.mxu0 %v681_v45  ;;  %v673_v53 = vor.u32 %v784_v48, %v672_v47  ;;  %v775_v55 = vld [vmem:[#allocation10 + $0x24] sm:$0xf]  ;;  %v664_v57 = vld [vmem:[#allocation10 + $0x50] sm:$0xf]  ;;  %v717_v59 = vor.u32 %v793_v40, %v714_v49 }
  0xae   : > { %344 = vmatpush.bf16.msra.mxu1 %v745_v50  ;;  %v737_v56 = vor.u32 %v800_v52, %v736_v51  ;;  %v782_v58 = vld [vmem:[#allocation10 + $0x54] sm:$0xf0]  ;;  %v642_v60 = vld [vmem:[#allocation10 + $0x28] sm:$0xf0]  ;;  %v728_v61 = vld [vmem:[#allocation10 + $0xd0] sm:$0xf] }
  0xaf   : > { %359 = vmatpush.bf16.msra.mxu2 %v669_v31  ;;  %v798_v62 = vld [vmem:[#allocation10 + $0xd4] sm:$0xf0]  ;;  %v791_v63 = vld [vmem:[#allocation10 + $0xa4] sm:$0xf]  ;;  %v706_v0 = vld [vmem:[#allocation10 + $0xa8] sm:$0xf0]  ;;  %v665_v1 = vor.u32 %v782_v58, %v664_v57  ;;  %v645_v3 = vor.u32 %v775_v55, %v642_v60 }
  0xb0   : > { %372 = vmatpush.bf16.msra.mxu3 %v733_v32  ;;  %v773_v4 = vld [vmem:[#allocation10 + $0x14] sm:$0xf]  ;;  %v729_v5 = vor.u32 %v798_v62, %v728_v61  ;;  %v656_v6 = vld [vmem:[#allocation10 + $0x40] sm:$0xf]  ;;  %v780_v7 = vld [vmem:[#allocation10 + $0x44] sm:$0xf0]  ;;  %v709_v8 = vor.u32 %v791_v63, %v706_v0 }
  0xb1   : > { %332 = vmatpush.bf16.msra.mxu0 %v673_v53  ;;  %v634_v9 = vld [vmem:[#allocation10 + $0x18] sm:$0xf0]  ;;  %v720_v10 = vld [vmem:[#allocation10 + $0xc0] sm:$0xf]  ;;  %v796_v12 = vld [vmem:[#allocation10 + $0xc4] sm:$0xf0]  ;;  %v657_v16 = vor.u32 %v780_v7, %v656_v6 }
  0xb2   : > { %345 = vmatpush.bf16.msra.mxu1 %v737_v56  ;;  %v789_v13 = vld [vmem:[#allocation10 + $0x94] sm:$0xf]  ;;  %v698_v14 = vld [vmem:[#allocation10 + $0x98] sm:$0xf0]  ;;  %v771_v15 = vld [vmem:[#allocation10 + $0x4] sm:$0xf]  ;;  %v637_v17 = vor.u32 %v773_v4, %v634_v9  ;;  %v721_v19 = vor.u32 %v796_v12, %v720_v10 }
  0xb3   : > { %360 = vmatpush.bf16.msra.mxu2 %v661_v39  ;;  %v131_v18 = vld [vmem:[#allocation2] sm:$0xff]  ;;  %v648_v20 = vld [vmem:[#allocation10 + $0x30] sm:$0xf]  ;;  %v778_v21 = vld [vmem:[#allocation10 + $0x34] sm:$0xf0]  ;;  %v701_v22 = vor.u32 %v789_v13, %v698_v14  ;;  %vm532_vm12 = vcmask 15368  }
  0xb4   : > { %373 = vmatpush.bf16.msra.mxu3 %v725_v44  ;;  %v626_v23 = vld [vmem:[#allocation10 + $0x8] sm:$0xf0]  ;;  %v712_v24 = vld [vmem:[#allocation10 + $0xb0] sm:$0xf]  ;;  %v794_v25 = vld [vmem:[#allocation10 + $0xb4] sm:$0xf0]  ;;  %v165_v28 = vunpack.c.l.b16 %v131_v18  ;;  %v649_v29 = vor.u32 %v778_v21, %v648_v20  ;;  %v166_v31 = vunpack.c.h.b16 %v131_v18 }
  0xb5   : > { %333 = vmatpush.bf16.msra.mxu0 %v665_v1  ;;  %v787_v26 = vld [vmem:[#allocation10 + $0x84] sm:$0xf]  ;;  %v690_v27 = vld [vmem:[#allocation10 + $0x88] sm:$0xf0]  ;;  %v629_v30 = vor.u32 %v771_v15, %v626_v23  ;;  %v713_v32 = vor.u32 %v794_v25, %v712_v24  ;;  %v640_v33 = vld [vmem:[#allocation10 + $0x20] sm:$0xf] }
  0xb6   : > { %346 = vmatpush.bf16.msra.mxu1 %v729_v5  ;;  %v776_v34 = vld [vmem:[#allocation10 + $0x24] sm:$0xf0]  ;;  %v693_v35 = vor.u32 %v787_v26, %v690_v27  ;;  %v704_v36 = vld [vmem:[#allocation10 + $0xa0] sm:$0xf]  ;;  %v167_v38 = vpack.c.b16 %v165_v28, %v165_v28  ;;  %v168_v40 = vpack.c.b16 %v166_v31, %v166_v31  ;;  %v632_v42 = vld [vmem:[#allocation10 + $0x10] sm:$0xf] }
  0xb7   : > { %361 = vmatpush.bf16.msra.mxu2 %v653_v54  ;;  %v792_v37 = vld [vmem:[#allocation10 + $0xa4] sm:$0xf0]  ;;  %v641_v39 = vor.u32 %v776_v34, %v640_v33  ;;  %v774_v43 = vld [vmem:[#allocation10 + $0x14] sm:$0xf0]  ;;  %v696_v44 = vld [vmem:[#allocation10 + $0x90] sm:$0xf] }
  0xb8   : > { %374 = vmatpush.bf16.msra.mxu3 %v717_v59  ;;  %v705_v41 = vor.u32 %v792_v37, %v704_v36  ;;  %v790_v45 = vld [vmem:[#allocation10 + $0x94] sm:$0xf0]  ;;  %v633_v46 = vor.u32 %v774_v43, %v632_v42  ;;  %v624_v48 = vld [vmem:[#allocation10] sm:$0xf]  ;;  %v772_v49 = vld [vmem:[#allocation10 + $0x4] sm:$0xf0] }
  0xb9   : > { %334 = vmatpush.bf16.msra.mxu0 %v657_v16  ;;  %v697_v47 = vor.u32 %v790_v45, %v696_v44  ;;  %v688_v50 = vld [vmem:[#allocation10 + $0x80] sm:$0xf]  ;;  %v788_v51 = vld [vmem:[#allocation10 + $0x84] sm:$0xf0]  ;;  %v625_v52 = vor.u32 %v772_v49, %v624_v48  ;;  %v805_v20 = vld [vmem:[#allocation11 + $0x10] sm:$0xff] }
  0xba   : > { %347 = vmatpush.bf16.msra.mxu1 %v721_v19  ;;  %v689_v53 = vor.u32 %v788_v51, %v688_v50  ;;  %v422_v1 = vld [vmem:[#allocation16] sm:$0xff]  ;;  %v806_v19 = vld [vmem:[#allocation11 + $0x18] sm:$0xff] }
  0xbb   : > { %362 = vmatpush.bf16.msra.mxu2 %v645_v3  ;;  %v804_v21 = vld [vmem:[#allocation11 + $0x8] sm:$0xff] }
  0xbc   : > { %375 = vmatpush.bf16.msra.mxu3 %v709_v8  ;;  %v839_v45 = vld [vmem:[%s1186_s4] ss:$0 sm:$0xff] }
  0xbd   : > { %335 = vmatpush.bf16.msra.mxu0 %v649_v29 }
  0xbe   : > { %348 = vmatpush.bf16.msra.mxu1 %v713_v32 }
  0xbf   : > { %363 = vmatpush.bf16.msra.mxu2 %v637_v17 }
  0xc0   : > { %376 = vmatpush.bf16.msra.mxu3 %v701_v22 }
  0xc1   : > { %336 = vmatpush.bf16.msra.mxu0 %v641_v39 }
  0xc2   : > { %349 = vmatpush.bf16.msra.mxu1 %v705_v41 }
  0xc3   : > { %364 = vmatpush.bf16.msra.mxu2 %v629_v30  ;;  %v803_v30 = vld [vmem:[#allocation11] sm:$0xff] }
  0xc4   : > { %377 = vmatpush.bf16.msra.mxu3 %v693_v35 }
  0xc5   : > { %337 = vmatpush.bf16.msra.mxu0 %v633_v46 }
  0xc6   : > { %365 = vmatmul.bf16.vlgmr.msra.gmra.mxu2 %v167_v38  ;;  %350 = vmatpush.bf16.msra.mxu1 %v697_v47 }
  0xc7   : > { %378 = vmatmul.bf16.vlgmr.msra.gmra.mxu3 %v168_v40 }
  0xc9   : > { %338 = vmatpush.bf16.msra.mxu0 %v625_v52  ;;  %v1068_v52 = vmov 0.0  }
  0xca   : > { %351 = vmatpush.bf16.msra.mxu1 %v689_v53 }
  0xcc   : > { %339 = vmatmul.bf16.vlgmr.msra.gmra.mxu0 %v167_v38 }
  0xcd   : > { %352 = vmatmul.bf16.vlgmr.msra.gmra.mxu1 %v168_v40  ;;  %488 = vmatpush.bf16.msrb.mxu0 %v806_v19 }
  0xd1   : > { %489 = vmatpush.bf16.msrb.mxu0 %v805_v20 }
  0xd5   : > { %490 = vmatpush.bf16.msrb.mxu0 %v804_v21 }
  0xd9   : > { %491 = vmatpush.bf16.msrb.mxu0 %v803_v30 }
 0x149   : > { %v366_v54 = vpop.f32.mrf.mxu2  ;;  %v340_v57 = vpop.f32.mrf.mxu0 }
 0x14a   : > { %v379_v55 = vpop.f32.mrf.mxu3  ;;  %v353_v58 = vpop.f32.mrf.mxu1 }
 0x14b   : > { %v380_v56 = vadd.f32 %v379_v55, %v366_v54  ;;  %v354_v59 = vadd.f32 %v353_v58, %v340_v57 }
 0x14d   : > { %840 = vtanh.f32 %v380_v56  ;;  %v750_v3 = vmul.f32 -1.442695, %v354_v59  ;;  %v751_v27 = vmul.f32 -1.442695, %v380_v56 }
 0x14f   : > { %842 = vpow2.f32 %v750_v3 }
 0x151   : > { %v368_v60 = vpop.f32.mrf.mxu2  ;;  %v342_v63 = vpop.f32.mrf.mxu0 }
 0x152   : > { %v381_v61 = vpop.f32.mrf.mxu3  ;;  %v355_v0 = vpop.f32.mrf.mxu1 }
 0x153   : > { %v841_v62 = vpop.eup %840 }
 0x154   : > { %429 = vrot.lane.b32.xlu0 %v841_v62, %s1067_s29 }
 0x155   : > { %v843_v4 = vpop.eup %842 }
 0x156   : > { %v389_v5 = vadd.f32 1.0, %v843_v4 }
 0x158   : > { %844 = vrcp.f32 %v389_v5  ;;  %vm396_vm3 = vweird.f32 %v389_v5  ;;  %v402_v10 = vand.u32 2147483648, %v389_v5  ;;  %v400_v13 = vand.u32 2147483647, %v389_v5 }
 0x15a   : > { %v403_v14 = vor.u32 1.1754944e-38, %v402_v10  ;;  %vm401_vm6 = vcmp.eq.f32.partialorder %v400_v13, 8.507059e+37 }
 0x15c   : > { %424 = vrot.lane.b32.xlu0 %v422_v1, %s1067_s29 }
 0x15e   : > { %v845_v6 = vpop.eup %844 }
 0x15f   : > { %v392_v7 = vmul.f32 %v845_v6, %v389_v5  ;;  %vm397_vm4 = vweird.f32 %v845_v6 }
 0x160   : > { %vm398_vm5 = vmor %vm396_vm3, %vm397_vm4 }
 0x161   : > { %v393_v8 = vsub.f32 1.0, %v392_v7 }
 0x163   : > { %v394_v9 = vmul.f32 %v845_v6, %v393_v8 }
 0x165   : > { %v395_v12 = vadd.f32 %v845_v6, %v394_v9 }
 0x167   : > { %v399_v15 = vsel %vm398_vm5, %v845_v6, %v395_v12 }
 0x168   : > { %v404_v17 = vsel %vm401_vm6, %v403_v14, %v399_v15 }
 0x1c6   : > { %v430_v16 = vpop.permute.xlu0 %429 }
 0x1c7   : > { %v432_v18 = vmul.f32 %v430_v16, %v404_v17 }
 0x1c9   : > { %434 = vrot.lane.b32.xlu1 %v432_v18, %s1067_s29 }
 0x1ce   : > { %v425_v22 = vpop.permute.xlu0 %424 }
 0x1cf   : > { %v427_v23 = vmul.f32 %v425_v22, %v404_v17 }
 0x23b   : > { %v435_v24 = vpop.permute.xlu1 %434 }
 0x23c   : > { %v437_v25 = vadd.f32 %v435_v24, %v427_v23 }
 0x23e   : > { %846 = vtanh.f32 %v437_v25 }
 0x23f   : > { %848 = vpow2.f32 %v751_v27 }
 0x244   : > { %v847_v26 = vpop.eup %846 }
 0x245   : > { %440 = vrot.lane.b32.xlu1 %v847_v26, %s1067_s29  ;;  %v849_v28 = vpop.eup %848 }
 0x246   : > { %v390_v29 = vadd.f32 1.0, %v849_v28 }
 0x248   : > { %850 = vrcp.f32 %v390_v29  ;;  %v417_v36 = vand.u32 2147483648, %v390_v29  ;;  %vm411_vm8 = vweird.f32 %v390_v29  ;;  %v415_v37 = vand.u32 2147483647, %v390_v29 }
 0x24a   : > { %v418_v39 = vor.u32 1.1754944e-38, %v417_v36  ;;  %vm416_vm10 = vcmp.eq.f32.partialorder %v415_v37, 8.507059e+37 }
 0x24d   : > { %524 = vrot.lane.b32.xlu1 %v437_v25, %s1067_s29 }
 0x24e   : > { %v851_v31 = vpop.eup %850 }
 0x24f   : > { %v407_v32 = vmul.f32 %v851_v31, %v390_v29  ;;  %vm412_vm7 = vweird.f32 %v851_v31 }
 0x250   : > { %vm413_vm9 = vmor %vm411_vm8, %vm412_vm7 }
 0x251   : > { %v408_v33 = vsub.f32 1.0, %v407_v32 }
 0x253   : > { %v409_v34 = vmul.f32 %v851_v31, %v408_v33 }
 0x255   : > { %v410_v35 = vadd.f32 %v851_v31, %v409_v34 }
 0x257   : > { %v414_v38 = vsel %vm413_vm9, %v851_v31, %v410_v35 }
 0x258   : > { %v419_v40 = vsel %vm416_vm10, %v418_v39, %v414_v38 }
 0x2b7   : > { %v441_v41 = vpop.permute.xlu1 %440 }
 0x2b8   : > { %v443_v42 = vmul.f32 %v441_v41, %v419_v40 }
 0x2ba   : > { %v444_v43 = vpack.c.bf16 %v443_v42, %v443_v42  ;;  %522 = vst.msk [vmem:[#allocation14] sm:$0xff] %vm97_vm2, %v443_v42 }
 0x2bc   : > { %768 = vmatmul.msk.bf16.vlgmr.msrb.gmra.mxu0 %vm97_vm2, %v444_v43  ;;  %v514_v51 = vsel %vm97_vm2, %v444_v43, %v1138_v11 }
 0x2bd   : > { %v518_v58 = vunpack.c.l.b16 %v514_v51 }
 0x2bf   : > { %v525_v44 = vpop.permute.xlu1 %524 }
 0x2c0   : > { %527 = vst.msk [vmem:[#allocation16] sm:$0xff] %vm97_vm2, %v525_v44 }
 0x339   : > { %v493_v46 = vpop.f32.mrf.mxu0 }
 0x33a   : > { %v494_v47 = vadd.f32 %v839_v45, %v493_v46 }
 0x33c   : > { %497 = vmax.xlane.f32.xlu2 %v494_v47 }
 0x341   : > { %v495_v48 = vpop.f32.mrf.mxu0 }
 0x3af   : > { %v498_v49 = vpop.xlane.xlu2 %497 }
 0x3b0   : > { %v499_v50 = vsub.f32 %v494_v47, %v498_v49  ;;  %vm510_vm11 = vcmp.eq.f32.partialorder %v494_v47, %v498_v49 }
 0x3b1   : > { %vm530_vm13 = vmand %vm510_vm11, %vm91_vm0  ;;  %v770_v53 = vsel %vm510_vm11, 1.0, %v1068_v52 }
 0x3b2   : > { %v500_v54 = vmul.f32 1.442695, %v499_v50  ;;  %v531_v55 = vsel %vm530_vm13, 1.0, %v1068_v52  ;;  %v513_v56 = vpack.c.bf16 %v770_v53, %v770_v53 }
 0x3b3   : > { %v533_v57 = vsel %vm532_vm12, %v531_v55, -inf }
 0x3b4   : > { %852 = vpow2.f32 %v500_v54  ;;  %534 = vmax.xlane.f32.xlu2 %v533_v57  ;;  %v517_v59 = vunpack.c.l.b16 %v513_v56 }
 0x3b6   : > { %v519_v60 = vpack.c.b16 %v518_v58, %v517_v59 }
 0x3b8   : > { %521 = vst [vmem:[#allocation2] sm:$0xff] %v519_v60 }
 0x3ba   : > { %v853_v61 = vpop.eup %852 }
 0x3bb   : > { %502 = vadd.xlane.f32.xlu0 %v853_v61 }
 0x427   : > { %v535_v62 = vpop.xlane.xlu2 %534 }
 0x428   : > { %v536_v63 = vrot.slane %v535_v62, 4 }
 0x42a   : > { %v537_v0 = vmax.f32 %v535_v62, %v536_v63 }
 0x42c   : > { %v538_v1 = vrot.slane %v537_v0, 2 }
 0x42e   : > { %v503_v3 = vpop.xlane.xlu0 %502  ;;  %v539_v4 = vmax.f32 %v537_v0, %v538_v1 }
 0x42f   : > { %854 = vlog2.f32 %v503_v3 }
 0x430   : > { %v540_v5 = vrot.slane %v539_v4, 1 }
 0x432   : > { %v541_v6 = vmax.f32 %v539_v4, %v540_v5 }
 0x434   : > { %807 = vpush %v541_v6 }
 0x435   : > { %v855_v7 = vpop.eup %854 }
 0x436   : > { %v505_v8 = vmul.f32 0.6931472, %v855_v7 }
 0x438   : > { %v506_v9 = vsub.f32 %v499_v50, %v505_v8 }
 0x43a   : > { %509 = vst [vmem:[%s508_s12] sm:$0xff] %v506_v9 }
 0x465   : > { %s808_s13 = spop %807 }
 0x466   : > { %s543_s14 = ssub.f32 1.0, %s808_s13 }
 0x468   : > { %p809_p1 = scmp.lt.s32.totalorder %s543_s14, 0  ;;  %s810_s15 = sceil.f32 %s543_s14 }
 0x469   : > { %s811_s16 = sfloor.f32 %s543_s14 }
 0x46a   : > { %s1192_s15 = smov (!%p809_p1, %s810_s15), %s811_s16 }
 0x46b   : > { %s813_s17 = scvt.f32.s32 %s1192_s15 }
 0x46d   : > { %545 = sst [smem:[#allocation3]] %s813_s17 }
 0x46e PF: > { %s125_s27 = sadd.s32 1, %s1054_s27  }
 0x46f   : > { %p122_p2 = scmp.ge.s32.totalorder %s125_s27, 8  }
 0x470   :  { %s566_s19 = sshll.u32 (%p122_p2), %s1188_s6, 4  ;;  %s1069_s20 = smov (%p122_p2), [#allocation14]   ;;  %s567_s19 = int_to_ptr.hbm [resolvable:$true] %s566_s19 }
 0x471   :  { %124 = sbr.rel (!%p122_p2) target bundleno = 151 (0x97), region = 94  ;;  %s564_s21 = sshll.u32 (%p122_p2), %s1069_s20, 4  ;;  %s565_s21 = int_to_ptr.vmem [resolvable:$true] %s564_s21 }
 0x472   :  { %569 = dma.vmem_to_hbm [thread:$0]  (%p122_p2), %s565_s21, 128, %s567_s19, [#allocation15]  }
 0x473   :  { %s1070_s23 = smov (%p122_p2), [#allocation13]   ;;  %s552_s3 = sshll.u32 (%p122_p2), %s1187_s5, 4  ;;  %s553_s3 = int_to_ptr.hbm [resolvable:$true] %s552_s3 }
 0x474   :  { %s550_s24 = sshll.u32 (%p122_p2), %s1070_s23, 4  ;;  %s577_s6 = sshll.u32 (%p122_p2), %s1189_s7, 4  ;;  %s551_s24 = int_to_ptr.vmem [resolvable:$true] %s550_s24  ;;  %s578_s6 = int_to_ptr.hbm [resolvable:$true] %s577_s6 }
 0x475   :  { %558 = dma.vmem_to_hbm [thread:$0]  (%p122_p2), %s551_s24, 1024, %s553_s3, [#allocation6], %s1059_s22, %s1059_s22, %s1060_s0  }
 0x476   :  { %s1071_s27 = smov [#allocation16]   ;;  %s586_s9 = sshll.u32 %s1190_s8, 4  ;;  %s587_s9 = int_to_ptr.hbm [resolvable:$true] %s586_s9 }
 0x477   :  { %s575_s28 = sshll.u32 %s1071_s27, 4  ;;  %s1072_s5 = smov [#allocation17]   ;;  %s576_s28 = int_to_ptr.vmem [resolvable:$true] %s575_s28 }
 0x478   :  { %580 = dma.vmem_to_hbm [thread:$0]  %s576_s28, 128, %s578_s6, [#allocation15]  }
 0x479   :  { %589 = dma.smem_to_hbm %s1072_s5, 16, %s587_s9, [#allocation7]  }
 0x47a   :  { %1046 = dma.done.wait [#allocation6], 1024  }
 0x47b   :  { %1047 = vsyncadd [#allocation6], 4294966272 }
 0x47c   :  { %1048 = dma.done.wait [#allocation15], 256  }
 0x47d   :  { %1049 = vsyncadd [#allocation15], 4294967040 }
 0x47e   :  { %1050 = dma.done.wait [#allocation7], 16  }
 0x47f   :  { %1051 = vsyncadd [#allocation7], 4294967280 }
 0x480   :  { %606 = sfence }
 0x481   :  { %607 = vsyncpa [#allocation5], 1 }
 0x482   :  { %608 = vsyncpa [#allocation9], 1 }
 0x483   :  { %609 = vsyncpa [#allocation12], 1 }
 0x484   :  { %610 = vsyncpa [#allocation6], 1 }
 0x485   :  { %611 = vsyncpa [#allocation15], 1 }
 0x486   :  { %612 = vsyncpa [#allocation7], 1 }

</bundles_post_ra>
